<compile_context>
chip_gen: v5e
topology: v5e:2x2
jax: 0.10.0
libtpu: 0.0.40
codegen_flags: <defaults>
</compile_context>

<pallas_src>
import math
import functools

import jax
import jax.numpy as jnp
from jax.experimental import pallas as pl
from jax.experimental.pallas import tpu as pltpu


def _make_pe_table(sequence_length: int, embedding_size: int) -> jnp.ndarray:
    """Deterministic sinusoidal PE table, shape (sequence_length, embedding_size)."""
    position = jnp.arange(sequence_length, dtype=jnp.float32)[:, None]          # (L, 1)
    div_term = jnp.exp(
        jnp.arange(0, embedding_size, 2, dtype=jnp.float32)
        * (-(math.log(10000.0) / embedding_size))
    )                                                                            # (E/2,)
    angles = position * div_term                                                 # (L, E/2)
    # even columns = sin, odd columns = cos (interleaved), matching the module.
    pe = jnp.stack([jnp.sin(angles), jnp.cos(angles)], axis=-1)                  # (L, E/2, 2)
    return pe.reshape(sequence_length, embedding_size)                           # (L, E)


def _mix_bits(gidx_u32, seed_u32):
    """Cheap stateless hash -> uniform uint32 bits (murmur-style finalizer)."""
    x = gidx_u32 ^ (seed_u32 * jnp.uint32(0x9E3779B1))
    x = (x ^ (x >> 16)) * jnp.uint32(0x7FEB352D)
    x = (x ^ (x >> 15)) * jnp.uint32(0x846CA68B)
    return x ^ (x >> 16)


def _posenc_kernel(seed_ref, x_ref, pe_ref, o_ref, *, dropout_p, training, tb, se):
    # x_ref: (tb, se) batch-row tile; pe_ref: (1, se) resident -> jnp broadcast.
    y = x_ref[...] + pe_ref[...]

    if training and 0.0 < dropout_p < 1.0:
        # Inverted dropout with a counter-based PRNG: mask depends only on
        # (seed, global element index), so it is identical across tilings.
        rows = jax.lax.broadcasted_iota(jnp.int32, (tb, se), 0)
        cols = jax.lax.broadcasted_iota(jnp.int32, (tb, se), 1)
        gidx = ((pl.program_id(0) * tb + rows) * se + cols).astype(jnp.uint32)
        bits = _mix_bits(gidx, seed_ref[0].astype(jnp.uint32))
        thresh = jnp.uint32(min(int(round(dropout_p * 4294967296.0)), 4294967295))
        keep = bits >= thresh
        scale = jnp.asarray(1.0 / (1.0 - dropout_p), dtype=y.dtype)
        y = jnp.where(keep, y * scale, jnp.zeros_like(y))

    o_ref[...] = y.astype(o_ref.dtype)


def positional_encoding(x, pe_table, *, dropout_p=0.0, training=False, seed=0):
    """x: (B, S, E). pe_table: (L, E) with L >= S. Returns (B, S, E)."""
    B, S, E = x.shape
    L = pe_table.shape[0]
    if S > L:
        raise ValueError(f"sequence length {S} exceeds PE table length {L}")

    # PyTorch nn.Dropout(p=1.0) zeroes everything; handle it outside the kernel
    # (the 1/(1-p) rescale would be inf).
    if training and dropout_p >= 1.0:
        return jnp.zeros_like(x)

    SE = S * E
    xf = x.reshape(B, SE)                                    # lane-dense last dim
    pef = pe_table[:S].astype(x.dtype).reshape(1, SE)        # resident PE slab

    # Batch tiling: target ~2 MiB per block (fits v5e's 16 MiB default scoped
    # VMEM with double-buffered in+out and the resident pe; plenty of slack on
    # v6e/v7x). Keep >= 2 grid blocks when possible so v7x's two TensorCores
    # both get work via dimension_semantics=("parallel",).
    itemsize = jnp.dtype(x.dtype).itemsize
    bytes_per_row = SE * itemsize
    target_block_bytes = 2 * 1024 * 1024
    budget_rows = max(1, target_block_bytes // bytes_per_row)
    if B <= budget_rows:
        if B >= 16:
            tb = (((B + 1) // 2) + 7) // 8 * 8               # ~half, multiple of 8
        else:
            tb = B                                           # block dim == array dim
    else:
        tb = max(8, (budget_rows // 8) * 8)                  # multiple of 8 sublanes
    grid = (pl.cdiv(B, tb),)

    seed_arr = jnp.array([seed], dtype=jnp.int32)
    kernel = functools.partial(
        _posenc_kernel,
        dropout_p=float(dropout_p),
        training=bool(training),
        tb=tb,
        se=SE,
    )

    out = pl.pallas_call(
        kernel,
        out_shape=jax.ShapeDtypeStruct((B, SE), x.dtype),
        grid=grid,
        in_specs=[
            pl.BlockSpec(memory_space=pltpu.SMEM),           # seed scalar
            pl.BlockSpec((tb, SE), lambda b: (b, 0)),        # x batch-row tile
            pl.BlockSpec((1, SE), lambda b: (0, 0)),         # pe, resident
        ],
        out_specs=pl.BlockSpec((tb, SE), lambda b: (b, 0)),
        compiler_params=pltpu.CompilerParams(
            dimension_semantics=("parallel",)
        ),
    )(seed_arr, xf, pef)
    return out.reshape(B, S, E)


if __name__ == "__main__":
    # Module config: embedding_size=32, dropout=0.1, sequence_length=16
    embedding_size = 32
    dropout = 0.1
    sequence_length = 16

    # Example input: batch=2, seq=8 (<= sequence_length), emb=32
    B, S, E = 2, 8, embedding_size
    key = jax.random.PRNGKey(0)
    x = jax.random.normal(key, (B, S, E), dtype=jnp.float32)

    pe_table = _make_pe_table(sequence_length, embedding_size)

    # Eval-mode forward (dropout is identity), deterministic.
    out = positional_encoding(x, pe_table, dropout_p=dropout, training=False)
    out = jax.block_until_ready(out)

    ref = x + pe_table[None, :S, :]
    assert out.shape == (B, S, E)
    assert jnp.allclose(out, ref, atol=1e-6, rtol=1e-6)

    # Training-mode (dropout) path: every element must be either dropped (0)
    # or the rescaled sum (x + pe) / (1 - p).
    out_train = positional_encoding(x, pe_table, dropout_p=dropout, training=True, seed=123)
    out_train = jax.block_until_ready(out_train)
    expected_kept = ref / (1.0 - dropout)
    ok = jnp.isclose(out_train, 0.0) | jnp.isclose(out_train, expected_kept, atol=1e-5, rtol=1e-5)
    assert bool(jnp.all(ok))

    print("KERNEL_OK")
</pallas_src>

<mosaic_0001>
module attributes {stable_mosaic.version = 11 : i64} {
  func.func @_posenc_kernel(%arg0: i32, %arg1: memref<1xi32, #tpu.memory_space<smem>>, %arg2: memref<2x256xf32, #tpu.memory_space<vmem>>, %arg3: memref<1x256xf32, #tpu.memory_space<vmem>>, %arg4: memref<2x256xf32, #tpu.memory_space<vmem>>) attributes {dimension_semantics = [#tpu.dimension_semantics<parallel>], iteration_bounds = array<i64: 1>, scalar_prefetch = 0 : i64, scratch_operands = 0 : i64, tpu.core_type = #tpu.core_type<tc>, window_params = [{transform_indices = @transform_0, window_bounds = array<i64: 1>}, {transform_indices = @transform_1, window_bounds = array<i64: 2, 256>}, {pipeline_mode = #tpu.pipeline_mode<synchronous>, transform_indices = @transform_2, window_bounds = array<i64: 1, 256>}, {transform_indices = @transform_3, window_bounds = array<i64: 2, 256>}]} {
    %c0 = arith.constant 0 : index
    %c0_0 = arith.constant 0 : index
    %0 = vector.load %arg2[%c0, %c0_0] : memref<2x256xf32, #tpu.memory_space<vmem>>, vector<2x256xf32>
    %c0_1 = arith.constant 0 : index
    %c0_2 = arith.constant 0 : index
    %1 = vector.load %arg3[%c0_1, %c0_2] : memref<1x256xf32, #tpu.memory_space<vmem>>, vector<1x256xf32>
    %2 = vector.broadcast %1 : vector<1x256xf32> to vector<2x256xf32>
    %3 = arith.addf %0, %2 : vector<2x256xf32>
    %c0_3 = arith.constant 0 : index
    %c0_4 = arith.constant 0 : index
    %4 = vector.load %arg4[%c0_3, %c0_4] : memref<2x256xf32, #tpu.memory_space<vmem>>, vector<2x256xf32>
    tpu.vector_store %arg4[%c0_3, %c0_4], %3 {strides = array<i32>} : memref<2x256xf32, #tpu.memory_space<vmem>>, vector<2x256xf32>,
    return
  }
  func.func @transform_0(%arg0: i32) -> i32 {
    %c0_i32 = arith.constant 0 : i32
    %c0_i32_0 = arith.constant 0 : i32
    return %c0_i32 : i32
  }
  func.func @transform_1(%arg0: i32) -> (i32, i32) {
    %c0_i32 = arith.constant 0 : i32
    %c0_i32_0 = arith.constant 0 : i32
    return %arg0, %c0_i32 : i32, i32
  }
  func.func @transform_2(%arg0: i32) -> (i32, i32) {
    %c0_i32 = arith.constant 0 : i32
    %c0_i32_0 = arith.constant 0 : i32
    %c0_i32_1 = arith.constant 0 : i32
    return %c0_i32, %c0_i32_0 : i32, i32
  }
  func.func @transform_3(%arg0: i32) -> (i32, i32) {
    %c0_i32 = arith.constant 0 : i32
    %c0_i32_0 = arith.constant 0 : i32
    return %arg0, %c0_i32 : i32, i32
  }
}

</mosaic_0001>

<bundles_post_ra>
// kernel: tpu_custom_call.1
= control target key start
LH: loop header
LB: loop body
LE: loop exit
PB: predicated region body
PF: predicated region fallthrough
CT: control target
= control target key end

     0   :  { %9 = vsyncpa [#allocation4], 0  ;;  %s143_s0 = inlined_call_operand.<no memory space> [shape: s32[1], index: 0, kind: input, shape index: {}]   ;;  %s144_s1 = inlined_call_operand.hbm [shape: f32[2,256], index: 1, kind: input, shape index: {}]   ;;  %s145_s2 = inlined_call_operand.vmem [shape: f32[1,256], index: 2, kind: input, shape index: {}]   ;;  %s146_s3 = inlined_call_operand.hbm [shape: f32[2,256], index: 3, kind: output, shape index: {}]  }
   0x1   :  { %10 = vsyncpa [#allocation5], 0  ;;  %s18_s14 = sshll.u32 %s144_s1, 4  ;;  %s112_s15 = smov [#allocation3]   ;;  %s19_s14 = int_to_ptr.hbm [resolvable:$true] %s18_s14 }
   0x2   :  { %s20_s16 = sshll.u32 %s112_s15, 4  ;;  %s21_s16 = int_to_ptr.vmem [resolvable:$true] %s20_s16 }
   0x3   :  { %23 = dma.hbm_to_vmem [thread:$0]  %s19_s14, 64, %s21_s16, [#allocation4]  }
   0x4   :  { %108 = dma.done.wait [#allocation4], 64  }
   0x5   :  { %109 = vsyncadd [#allocation4], 4294967232  ;;  %v31_v0 = vld [vmem:[%s145_s2] sm:$0x3]  ;;  %vm36_vm0 = vcmask 1041408   ;;  %s113_s18 = smov [#allocation6]  }
   0x6   :  { %v33_v1 = vperm.slane %v31_v0, 0  ;;  %v34_v2 = vperm.slane %v31_v0, 1  ;;  %v30_v3 = vld [vmem:[#allocation3] sm:$0xf]  ;;  %s46_s19 = sshll.u32 %s113_s18, 4  ;;  %s48_s21 = sshll.u32 %s146_s3, 4  ;;  %s47_s19 = int_to_ptr.vmem [resolvable:$true] %s46_s19  ;;  %s49_s21 = int_to_ptr.hbm [resolvable:$true] %s48_s21 }
   0x8   :  { %v35_v4 = vrot.slane %v34_v2, 6 }
   0xa   :  { %v37_v5 = vsel %vm36_vm0, %v33_v1, %v35_v4 }
   0xb   :  { %v39_v6 = vadd.f32 %v37_v5, %v30_v3 }
   0xd   :  { %40 = vst [vmem:[#allocation6] sm:$0xf] %v39_v6 }
   0xe   :  { %51 = dma.vmem_to_hbm [thread:$0]  %s47_s19, 64, %s49_s21, [#allocation5]  }
   0xf   :  { %110 = dma.done.wait [#allocation5], 64  }
  0x10   :  { %111 = vsyncadd [#allocation5], 4294967232 }
  0x11   :  { %56 = vsyncpa [#allocation4], 1 }
  0x12   :  { %57 = vsyncpa [#allocation5], 1 }

</bundles_post_ra>
